<compile_context>
chip_gen: v7x
topology: tpu7x:2x2x1
jax: 0.10.0
libtpu: 0.0.40
codegen_flags: <defaults>
</compile_context>

<pallas_src>
import functools
import math

import jax
import jax.numpy as jnp
from jax.experimental import pallas as pl
from jax.experimental.pallas import tpu as pltpu


# Detect once whether this jax version supports single-buffered BlockSpecs.
_HAS_BUFFERED = True
try:
    pl.BlockSpec((8, 128), lambda i: (0, 0), pipeline_mode=pl.Buffered(1))
except Exception:  # pragma: no cover - older jax
    _HAS_BUFFERED = False


def _round_up(x, m):
    return ((x + m - 1) // m) * m


def _mlp_kernel(x_ref, *refs, n_layers):
    """Fused MLP on one batch tile. refs = (w0, b0, w1, b1, ..., out_ref)."""
    out_ref = refs[-1]
    wb = refs[:-1]
    h = x_ref[...]  # keep input dtype; cast per-layer inside the dot
    for li in range(n_layers):
        w = wb[2 * li][...]
        b = wb[2 * li + 1][...]
        # MXU matmul with f32 accumulation (safe for bf16 inputs/weights too).
        h = jnp.dot(h.astype(w.dtype), w, preferred_element_type=jnp.float32)
        h = h + b.astype(jnp.float32)
        if li < n_layers - 1:
            h = jnp.maximum(h, 0.0)  # ReLU between layers, none after last
    out_ref[...] = h.astype(out_ref.dtype)


def _resident_spec(shape):
    """Full-extent, grid-invariant block; single-buffered when supported."""
    idx_map = lambda i: (0,) * len(shape)
    if _HAS_BUFFERED:
        try:
            return pl.BlockSpec(shape, idx_map, pipeline_mode=pl.Buffered(1))
        except Exception:  # pragma: no cover
            pass
    return pl.BlockSpec(shape, idx_map)


def _vmem_budgets():
    """(tile_budget_bytes, vmem_limit_bytes) from this chip's VMEM size."""
    try:
        vmem_cap = int(pltpu.get_tpu_info().vmem_capacity_bytes)
    except Exception:  # pragma: no cover - be conservative (v7x per-TC VMEM)
        vmem_cap = 64 * 1024 * 1024
    vmem_cap = max(32 * 1024 * 1024, min(vmem_cap, 128 * 1024 * 1024))
    tile_budget = int(vmem_cap * 0.65)   # tiles + resident weights
    vmem_limit = int(vmem_cap * 0.85)    # scoped limit, headroom for Mosaic
    return tile_budget, vmem_limit


def _max_batch_tile(in_dim, out_dim_p, hid_max, itemsize, weight_resident_bytes,
                    tile_budget):
    """Largest multiple-of-8 row tile that fits resident weights, the
    double-buffered in/out pipeline tiles AND the in-kernel f32
    intermediates inside the tile budget. None if weights alone don't fit."""
    per_row = (2 * (in_dim + out_dim_p) * itemsize       # pipelined in/out tiles
               + 4 * (hid_max + out_dim_p))              # f32 intermediates
    avail = tile_budget - weight_resident_bytes
    if avail < 8 * per_row:
        return None
    tb = (avail // per_row // 8) * 8
    return int(min(tb, 2048))


def _choose_tb(n_pad8, max_tb):
    """Pick the batch tile. Prefer a multiple-of-8 divisor of n_pad8 (no HBM
    padding pass); fall back to a padded near-max tile only when the largest
    divisor is tiny (so per-grid-step overhead would dominate)."""
    max_tb = min(max_tb, n_pad8)
    best_div = 8
    t = 8
    while t <= max_tb:
        if n_pad8 % t == 0:
            best_div = t
        t += 8
    if best_div == max_tb or best_div >= max(64, max_tb // 4):
        return best_div, n_pad8
    return max_tb, _round_up(n_pad8, max_tb)


def flatten_mlp_forward(X, params, in_shape, out_shape, *,
                        prefer_pallas="auto", compute_dtype=None):
    """Pallas equivalent of FlattenMLP.forward.

    X        : array with trailing dims == in_shape (arbitrary leading dims)
    params   : list of (W, b) with W: [d_in, d_out] (JAX convention), b: [d_out]
               ReLU is applied between all layers except after the last one.
    compute_dtype : optional dtype (e.g. jnp.bfloat16) for the MXU inputs;
               accumulation stays in float32.
    Returns  : array of shape (*leading_dims, *out_shape)
    """
    in_shape = tuple(in_shape)
    out_shape = tuple(out_shape)
    in_dim = math.prod(in_shape)
    out_dim = math.prod(out_shape)
    n_in = len(in_shape)

    assert X.shape[X.ndim - n_in:] == in_shape, (X.shape, in_shape)
    lead = X.shape[: X.ndim - n_in]

    x2d = X.reshape((-1, in_dim))
    N = x2d.shape[0]
    n_layers = len(params)
    assert n_layers >= 1
    assert params[0][0].shape[0] == in_dim and params[-1][0].shape[1] == out_dim

    def _xla_path(h=x2d):
        # Same f32-accumulation numerics as the Pallas path.
        for li, (w, b) in enumerate(params):
            h = jnp.dot(h.astype(w.dtype), w, preferred_element_type=jnp.float32)
            h = h + b.astype(jnp.float32)
            if li < n_layers - 1:
                h = jnp.maximum(h, 0.0)
        return h.astype(X.dtype).reshape(*lead, *out_shape)

    # For tiny workloads a standalone kernel is pure launch overhead.
    work = N * (in_dim + out_dim)
    use_pallas = prefer_pallas if isinstance(prefer_pallas, bool) else work >= (1 << 16)
    if not use_pallas:
        return _xla_path()

    # ---- prepare kernel-side params -------------------------------------
    kparams = [(w.astype(compute_dtype), b) if compute_dtype is not None else (w, b)
               for (w, b) in params]

    # Lane-dense output: pad the final feature dim to a multiple of 128 so the
    # output tile uses full (unmasked) vector stores.
    out_dim_p = _round_up(out_dim, 128)
    if out_dim_p != out_dim:
        wl, bl = kparams[-1]
        wl = jnp.pad(wl, ((0, 0), (0, out_dim_p - out_dim)))
        bl = jnp.pad(bl, ((0, out_dim_p - out_dim),))
        kparams[-1] = (wl, bl)

    itemsize = jnp.dtype(X.dtype).itemsize
    weight_bytes = sum(w.size * jnp.dtype(w.dtype).itemsize
                       + b.size * jnp.dtype(b.dtype).itemsize
                       for w, b in kparams)
    weight_bufs = 1 if _HAS_BUFFERED else 2
    hid_max = max(w.shape[1] for w, _ in kparams)

    tile_budget, vmem_limit = _vmem_budgets()
    max_tb = _max_batch_tile(in_dim, out_dim_p, hid_max, itemsize,
                             weight_bytes * weight_bufs, tile_budget)
    if max_tb is None:
        # Weights don't fit resident in this generation's VMEM (e.g. v7x's
        # 64 MiB) — let XLA tile the matmuls itself.
        # TODO(synk): add a K-tiled (grid over in_dim) Pallas fallback with an
        # f32 accumulator scratch for very large weight matrices.
        return _xla_path()

    N_pad8 = _round_up(N, 8)
    if N_pad8 >= 16:
        # Keep >= 2 batch tiles so the "parallel" grid axis feeds both v7x TCs.
        max_tb = min(max_tb, _round_up(pl.cdiv(N_pad8, 2), 8))
    TB, N_pad = _choose_tb(N_pad8, max_tb)
    if N_pad != N:
        x2d = jnp.pad(x2d, ((0, N_pad - N), (0, 0)))
    n_tiles = N_pad // TB

    # ---- BlockSpecs -------------------------------------------------------
    in_specs = [pl.BlockSpec((TB, in_dim), lambda i: (i, 0))]
    flat_params = []
    for w, b in kparams:
        b2 = b.reshape(1, -1)
        flat_params += [w, b2]
        in_specs += [_resident_spec(w.shape), _resident_spec(b2.shape)]

    out = pl.pallas_call(
        functools.partial(_mlp_kernel, n_layers=n_layers),
        out_shape=jax.ShapeDtypeStruct((N_pad, out_dim_p), X.dtype),
        grid=(n_tiles,),
        in_specs=in_specs,
        out_specs=pl.BlockSpec((TB, out_dim_p), lambda i: (i, 0)),
        compiler_params=pltpu.CompilerParams(
            dimension_semantics=("parallel",),   # shard batch tiles across TCs
            vmem_limit_bytes=vmem_limit,
        ),
    )(x2d, *flat_params)

    if N_pad != N or out_dim_p != out_dim:
        out = out[:N, :out_dim]
    return out.reshape(*lead, *out_shape)


# TODO(synk): GDN activation, BatchNorm norm_layer and Dropout (training-mode)
# MLP variants are not implemented; this kernel covers the default
# Identity-norm + ReLU + no-dropout configuration of FlattenMLP/MLP.


if __name__ == "__main__":
    key = jax.random.PRNGKey(0)
    k_x, k_w1, k_b1, k_w2, k_b2 = jax.random.split(key, 5)

    batch = 2
    in_shape = (4, 16, 16)    # flattened to in_dim = 1024
    out_shape = (4, 16, 16)   # out_dim = 1024
    hid_dim = 32              # MLP default structure: Linear -> ReLU -> Linear

    in_dim = math.prod(in_shape)
    out_dim = math.prod(out_shape)

    X = jax.random.normal(k_x, (batch,) + in_shape, dtype=jnp.float32)
    w1 = jax.random.normal(k_w1, (in_dim, hid_dim), jnp.float32) * (1.0 / math.sqrt(in_dim))
    b1 = jax.random.normal(k_b1, (hid_dim,), jnp.float32) * 0.1
    w2 = jax.random.normal(k_w2, (hid_dim, out_dim), jnp.float32) * (1.0 / math.sqrt(hid_dim))
    b2 = jax.random.normal(k_b2, (out_dim,), jnp.float32) * 0.1
    params = [(w1, b1), (w2, b2)]

    y = flatten_mlp_forward(X, params, in_shape, out_shape, prefer_pallas=True)
    y = jax.block_until_ready(y)

    # Plain-JAX reference of the same FlattenMLP forward pass.
    xr = X.reshape(-1, in_dim)
    ref = jnp.maximum(xr @ w1 + b1, 0.0) @ w2 + b2
    ref = ref.reshape((batch,) + out_shape)

    assert y.shape == (batch,) + out_shape, y.shape
    assert jnp.allclose(y, ref, rtol=2e-3, atol=2e-3), float(jnp.max(jnp.abs(y - ref)))

    print("KERNEL_OK")
</pallas_src>

<mosaic_0001>
module attributes {stable_mosaic.version = 11 : i64} {
  func.func @_mlp_kernel(%arg0: i32, %arg1: memref<8x1024xf32, #tpu.memory_space<vmem>>, %arg2: memref<1024x32xf32, #tpu.memory_space<vmem>>, %arg3: memref<1x32xf32, #tpu.memory_space<vmem>>, %arg4: memref<32x1024xf32, #tpu.memory_space<vmem>>, %arg5: memref<1x1024xf32, #tpu.memory_space<vmem>>, %arg6: memref<8x1024xf32, #tpu.memory_space<vmem>>) attributes {dimension_semantics = [#tpu.dimension_semantics<parallel>], iteration_bounds = array<i64: 1>, scalar_prefetch = 0 : i64, scratch_operands = 0 : i64, tpu.core_type = #tpu.core_type<tc>, window_params = [{transform_indices = @transform_0, window_bounds = array<i64: 8, 1024>}, {pipeline_mode = #tpu.pipeline_mode<synchronous>, transform_indices = @transform_1, window_bounds = array<i64: 1024, 32>}, {pipeline_mode = #tpu.pipeline_mode<synchronous>, transform_indices = @transform_2, window_bounds = array<i64: 1, 32>}, {pipeline_mode = #tpu.pipeline_mode<synchronous>, transform_indices = @transform_3, window_bounds = array<i64: 32, 1024>}, {pipeline_mode = #tpu.pipeline_mode<synchronous>, transform_indices = @transform_4, window_bounds = array<i64: 1, 1024>}, {transform_indices = @transform_5, window_bounds = array<i64: 8, 1024>}]} {
    %c0 = arith.constant 0 : index
    %c0_0 = arith.constant 0 : index
    %0 = vector.load %arg1[%c0, %c0_0] : memref<8x1024xf32, #tpu.memory_space<vmem>>, vector<8x1024xf32>
    %c0_1 = arith.constant 0 : index
    %c0_2 = arith.constant 0 : index
    %1 = vector.load %arg2[%c0_1, %c0_2] : memref<1024x32xf32, #tpu.memory_space<vmem>>, vector<1024x32xf32>
    %c0_3 = arith.constant 0 : index
    %c0_4 = arith.constant 0 : index
    %2 = vector.load %arg3[%c0_3, %c0_4] : memref<1x32xf32, #tpu.memory_space<vmem>>, vector<1x32xf32>
    %cst = arith.constant dense<0.000000e+00> : vector<8x32xf32>
    %3 = tpu.matmul %0, %1, %cst {dimension_numbers = #tpu.dot_dimension_numbers<[1], [0], [0], [1], [0, 0, 1, 1], [], []>} : vector<8x1024xf32>, vector<1024x32xf32>, vector<8x32xf32> -> vector<8x32xf32>
    %4 = vector.broadcast %2 : vector<1x32xf32> to vector<8x32xf32>
    %5 = arith.addf %3, %4 : vector<8x32xf32>
    %cst_5 = arith.constant 0.000000e+00 : f32
    %6 = vector.broadcast %cst_5 : f32 to vector<8x32xf32>
    %7 = arith.maximumf %5, %6 : vector<8x32xf32>
    %c0_6 = arith.constant 0 : index
    %c0_7 = arith.constant 0 : index
    %8 = vector.load %arg4[%c0_6, %c0_7] : memref<32x1024xf32, #tpu.memory_space<vmem>>, vector<32x1024xf32>
    %c0_8 = arith.constant 0 : index
    %c0_9 = arith.constant 0 : index
    %9 = vector.load %arg5[%c0_8, %c0_9] : memref<1x1024xf32, #tpu.memory_space<vmem>>, vector<1x1024xf32>
    %cst_10 = arith.constant dense<0.000000e+00> : vector<8x1024xf32>
    %10 = tpu.matmul %7, %8, %cst_10 {dimension_numbers = #tpu.dot_dimension_numbers<[1], [0], [0], [1], [0, 0, 1, 1], [], []>} : vector<8x32xf32>, vector<32x1024xf32>, vector<8x1024xf32> -> vector<8x1024xf32>
    %11 = vector.broadcast %9 : vector<1x1024xf32> to vector<8x1024xf32>
    %12 = arith.addf %10, %11 : vector<8x1024xf32>
    %c0_11 = arith.constant 0 : index
    %c0_12 = arith.constant 0 : index
    %13 = vector.load %arg6[%c0_11, %c0_12] : memref<8x1024xf32, #tpu.memory_space<vmem>>, vector<8x1024xf32>
    tpu.vector_store %arg6[%c0_11, %c0_12], %12 {strides = array<i32>} : memref<8x1024xf32, #tpu.memory_space<vmem>>, vector<8x1024xf32>,
    return
  }
  func.func @transform_0(%arg0: i32) -> (i32, i32) {
    %c0_i32 = arith.constant 0 : i32
    %c0_i32_0 = arith.constant 0 : i32
    return %arg0, %c0_i32 : i32, i32
  }
  func.func @transform_1(%arg0: i32) -> (i32, i32) {
    %c0_i32 = arith.constant 0 : i32
    %c0_i32_0 = arith.constant 0 : i32
    %c0_i32_1 = arith.constant 0 : i32
    return %c0_i32, %c0_i32_0 : i32, i32
  }
  func.func @transform_2(%arg0: i32) -> (i32, i32) {
    %c0_i32 = arith.constant 0 : i32
    %c0_i32_0 = arith.constant 0 : i32
    %c0_i32_1 = arith.constant 0 : i32
    return %c0_i32, %c0_i32_0 : i32, i32
  }
  func.func @transform_3(%arg0: i32) -> (i32, i32) {
    %c0_i32 = arith.constant 0 : i32
    %c0_i32_0 = arith.constant 0 : i32
    %c0_i32_1 = arith.constant 0 : i32
    return %c0_i32, %c0_i32_0 : i32, i32
  }
  func.func @transform_4(%arg0: i32) -> (i32, i32) {
    %c0_i32 = arith.constant 0 : i32
    %c0_i32_0 = arith.constant 0 : i32
    %c0_i32_1 = arith.constant 0 : i32
    return %c0_i32, %c0_i32_0 : i32, i32
  }
  func.func @transform_5(%arg0: i32) -> (i32, i32) {
    %c0_i32 = arith.constant 0 : i32
    %c0_i32_0 = arith.constant 0 : i32
    return %arg0, %c0_i32 : i32, i32
  }
}

</mosaic_0001>

<bundles_post_ra>
// kernel: tpu_custom_call.1
= control target key start
LH: loop header
LB: loop body
LE: loop exit
PB: predicated region body
PF: predicated region fallthrough
CT: control target
= control target key end

     0   :  { %s1718_s0 = inlined_call_operand.vmem [shape: f32[8,1024], index: 0, kind: input, shape index: {}]   ;;  %s1719_s1 = inlined_call_operand.vmem [shape: f32[1024,32], index: 1, kind: input, shape index: {}]   ;;  %s1720_s2 = inlined_call_operand.vmem [shape: f32[1,32], index: 2, kind: input, shape index: {}]   ;;  %s1721_s3 = inlined_call_operand.vmem [shape: f32[32,1024], index: 3, kind: input, shape index: {}]   ;;  %s1722_s4 = inlined_call_operand.vmem [shape: f32[1,1024], index: 4, kind: input, shape index: {}]   ;;  %s1723_s5 = inlined_call_operand.hbm [shape: f32[8,1024], index: 5, kind: output, shape index: {}]  }
   0x1   :  { %v45_v0 = vld [vmem:[%s1719_s1 + $0x80] sm:$0xff]  ;;  %v46_v1 = vld [vmem:[%s1719_s1 + $0x88] sm:$0xff]  ;;  %v47_v11 = vld [vmem:[%s1719_s1 + $0x90] sm:$0xff] }
   0x2   :  { %v29_v2 = vld [vmem:[%s1719_s1] sm:$0xff]  ;;  %v974_v3 = vpack.c.bf16 %v46_v1, %v45_v0  ;;  %v30_v4 = vld [vmem:[%s1719_s1 + $0x8] sm:$0xff]  ;;  %v48_v13 = vld [vmem:[%s1719_s1 + $0x98] sm:$0xff] }
   0x3   :  { %v77_v5 = vld [vmem:[%s1719_s1 + $0x180] sm:$0xff]  ;;  %v78_v6 = vld [vmem:[%s1719_s1 + $0x188] sm:$0xff]  ;;  %v976_v7 = vpack.c.bf16 %v30_v4, %v29_v2  ;;  %v31_v14 = vld [vmem:[%s1719_s1 + $0x10] sm:$0xff]  ;;  %v978_v16 = vpack.c.bf16 %v48_v13, %v47_v11 }
   0x4   :  { %v1006_v8 = vpack.c.bf16 %v78_v6, %v77_v5  ;;  %v61_v9 = vld [vmem:[%s1719_s1 + $0x100] sm:$0xff]  ;;  %v62_v10 = vld [vmem:[%s1719_s1 + $0x108] sm:$0xff]  ;;  %975 = vmatprep.subr.bf16.mxu0 %v974_v3  ;;  %v32_v15 = vld [vmem:[%s1719_s1 + $0x18] sm:$0xff] }
   0x5   :  { %v1008_v12 = vpack.c.bf16 %v62_v10, %v61_v9  ;;  %977 = vmatpush3.bf16.msra.mxu0 %v976_v7  ;;  %v980_v17 = vpack.c.bf16 %v32_v15, %v31_v14  ;;  %v79_v18 = vld [vmem:[%s1719_s1 + $0x190] sm:$0xff]  ;;  %v80_v19 = vld [vmem:[%s1719_s1 + $0x198] sm:$0xff]  ;;  %v49_v23 = vld [vmem:[%s1719_s1 + $0xa0] sm:$0xff] }
   0x6   :  { %1007 = vmatprep.subr.bf16.mxu1 %v1006_v8  ;;  %v63_v20 = vld [vmem:[%s1719_s1 + $0x110] sm:$0xff]  ;;  %v1010_v21 = vpack.c.bf16 %v80_v19, %v79_v18  ;;  %v64_v22 = vld [vmem:[%s1719_s1 + $0x118] sm:$0xff]  ;;  %v50_v24 = vld [vmem:[%s1719_s1 + $0xa8] sm:$0xff]  ;;  %979 = vmatprep.subr.bf16.mxu0 %v978_v16 }
   0x7   :  { %1009 = vmatpush3.bf16.msra.mxu1 %v1008_v12  ;;  %v1012_v25 = vpack.c.bf16 %v64_v22, %v63_v20  ;;  %v982_v26 = vpack.c.bf16 %v50_v24, %v49_v23  ;;  %v33_v27 = vld [vmem:[%s1719_s1 + $0x20] sm:$0xff]  ;;  %v34_v28 = vld [vmem:[%s1719_s1 + $0x28] sm:$0xff]  ;;  %v51_v35 = vld [vmem:[%s1719_s1 + $0xb0] sm:$0xff] }
   0x8   :  { %v81_v29 = vld [vmem:[%s1719_s1 + $0x1a0] sm:$0xff]  ;;  %1011 = vmatprep.subr.bf16.mxu1 %v1010_v21  ;;  %v82_v30 = vld [vmem:[%s1719_s1 + $0x1a8] sm:$0xff]  ;;  %v984_v33 = vpack.c.bf16 %v34_v28, %v33_v27  ;;  %v52_v36 = vld [vmem:[%s1719_s1 + $0xb8] sm:$0xff] }
   0x9   :  { %v65_v31 = vld [vmem:[%s1719_s1 + $0x120] sm:$0xff]  ;;  %v66_v32 = vld [vmem:[%s1719_s1 + $0x128] sm:$0xff]  ;;  %981 = vmatpush3.bf16.msra.mxu0 %v980_v17  ;;  %v1014_v34 = vpack.c.bf16 %v82_v30, %v81_v29  ;;  %v35_v37 = vld [vmem:[%s1719_s1 + $0x30] sm:$0xff]  ;;  %v986_v39 = vpack.c.bf16 %v52_v36, %v51_v35 }
   0xa   :  { %983 = vmatprep.subr.bf16.mxu0 %v982_v26  ;;  %v1016_v38 = vpack.c.bf16 %v66_v32, %v65_v31  ;;  %v36_v40 = vld [vmem:[%s1719_s1 + $0x38] sm:$0xff]  ;;  %v83_v41 = vld [vmem:[%s1719_s1 + $0x1b0] sm:$0xff]  ;;  %v53_v46 = vld [vmem:[%s1719_s1 + $0xc0] sm:$0xff] }
   0xb   :  { %1013 = vmatpush3.bf16.msra.mxu1 %v1012_v25  ;;  %v84_v42 = vld [vmem:[%s1719_s1 + $0x1b8] sm:$0xff]  ;;  %v67_v44 = vld [vmem:[%s1719_s1 + $0x130] sm:$0xff]  ;;  %v54_v47 = vld [vmem:[%s1719_s1 + $0xc8] sm:$0xff]  ;;  %v988_v48 = vpack.c.bf16 %v36_v40, %v35_v37 }
   0xc   :  { %1015 = vmatprep.subr.bf16.mxu1 %v1014_v34  ;;  %v1018_v43 = vpack.c.bf16 %v84_v42, %v83_v41  ;;  %v68_v45 = vld [vmem:[%s1719_s1 + $0x138] sm:$0xff]  ;;  %v85_v49 = vld [vmem:[%s1719_s1 + $0x1c0] sm:$0xff]  ;;  %v86_v50 = vld [vmem:[%s1719_s1 + $0x1c8] sm:$0xff]  ;;  %v990_v52 = vpack.c.bf16 %v54_v47, %v53_v46 }
   0xd   :  { %985 = vmatpush3.bf16.msra.mxu0 %v984_v33  ;;  %v1020_v51 = vpack.c.bf16 %v68_v45, %v67_v44  ;;  %v37_v53 = vld [vmem:[%s1719_s1 + $0x40] sm:$0xff]  ;;  %v38_v54 = vld [vmem:[%s1719_s1 + $0x48] sm:$0xff]  ;;  %v1022_v56 = vpack.c.bf16 %v86_v50, %v85_v49  ;;  %v55_v58 = vld [vmem:[%s1719_s1 + $0xd0] sm:$0xff] }
   0xe   :  { %987 = vmatprep.subr.bf16.mxu0 %v986_v39  ;;  %v69_v55 = vld [vmem:[%s1719_s1 + $0x140] sm:$0xff]  ;;  %v70_v57 = vld [vmem:[%s1719_s1 + $0x148] sm:$0xff]  ;;  %v56_v59 = vld [vmem:[%s1719_s1 + $0xd8] sm:$0xff]  ;;  %v992_v62 = vpack.c.bf16 %v38_v54, %v37_v53 }
   0xf   :  { %1017 = vmatpush3.bf16.msra.mxu1 %v1016_v38  ;;  %v87_v60 = vld [vmem:[%s1719_s1 + $0x1d0] sm:$0xff]  ;;  %v88_v61 = vld [vmem:[%s1719_s1 + $0x1d8] sm:$0xff]  ;;  %v1024_v63 = vpack.c.bf16 %v70_v57, %v69_v55  ;;  %v994_v0 = vpack.c.bf16 %v56_v59, %v55_v58  ;;  %v57_v6 = vld [vmem:[%s1719_s1 + $0xe0] sm:$0xff] }
  0x10   :  { %1019 = vmatprep.subr.bf16.mxu1 %v1018_v43  ;;  %v39_v1 = vld [vmem:[%s1719_s1 + $0x50] sm:$0xff]  ;;  %v40_v2 = vld [vmem:[%s1719_s1 + $0x58] sm:$0xff]  ;;  %v1026_v4 = vpack.c.bf16 %v88_v61, %v87_v60  ;;  %v58_v7 = vld [vmem:[%s1719_s1 + $0xe8] sm:$0xff] }
  0x11   :  { %989 = vmatpush3.bf16.msra.mxu0 %v988_v48  ;;  %v71_v3 = vld [vmem:[%s1719_s1 + $0x150] sm:$0xff]  ;;  %v72_v5 = vld [vmem:[%s1719_s1 + $0x158] sm:$0xff]  ;;  %v89_v8 = vld [vmem:[%s1719_s1 + $0x1e0] sm:$0xff]  ;;  %v996_v10 = vpack.c.bf16 %v40_v2, %v39_v1  ;;  %v998_v14 = vpack.c.bf16 %v58_v7, %v57_v6 }
  0x12   :  { %991 = vmatprep.subr.bf16.mxu0 %v990_v52  ;;  %v90_v9 = vld [vmem:[%s1719_s1 + $0x1e8] sm:$0xff]  ;;  %v41_v11 = vld [vmem:[%s1719_s1 + $0x60] sm:$0xff]  ;;  %v1028_v13 = vpack.c.bf16 %v72_v5, %v71_v3  ;;  %v59_v19 = vld [vmem:[%s1719_s1 + $0xf0] sm:$0xff] }
  0x13   :  { %1021 = vmatpush3.bf16.msra.mxu1 %v1020_v51  ;;  %v42_v12 = vld [vmem:[%s1719_s1 + $0x68] sm:$0xff]  ;;  %v73_v15 = vld [vmem:[%s1719_s1 + $0x160] sm:$0xff]  ;;  %v1030_v18 = vpack.c.bf16 %v90_v9, %v89_v8  ;;  %v60_v20 = vld [vmem:[%s1719_s1 + $0xf8] sm:$0xff] }
  0x14   :  { %1023 = vmatprep.subr.bf16.mxu1 %v1022_v56  ;;  %v74_v16 = vld [vmem:[%s1719_s1 + $0x168] sm:$0xff]  ;;  %v24_v21 = vld [vmem:[%s1718_s0 + $0x18] sm:$0xff]  ;;  %v91_v22 = vld [vmem:[%s1719_s1 + $0x1f0] sm:$0xff]  ;;  %v1000_v24 = vpack.c.bf16 %v42_v12, %v41_v11  ;;  %v1002_v26 = vpack.c.bf16 %v60_v20, %v59_v19 }
  0x15   :  { %993 = vmatpush3.bf16.msra.mxu0 %v992_v62  ;;  %v22_v17 = vld [vmem:[%s1718_s0 + $0x8] sm:$0xff]  ;;  %v92_v23 = vld [vmem:[%s1719_s1 + $0x1f8] sm:$0xff]  ;;  %298 = vmatprep.mubr.f32.mxu1 %v24_v21  ;;  %v1032_v25 = vpack.c.bf16 %v74_v16, %v73_v15  ;;  %v43_v27 = vld [vmem:[%s1719_s1 + $0x70] sm:$0xff] }
  0x16   :  { %995 = vmatprep.subr.bf16.mxu0 %v994_v0  ;;  %228 = vmatprep.mubr.f32.mxu0 %v22_v17  ;;  %v44_v28 = vld [vmem:[%s1719_s1 + $0x78] sm:$0xff]  ;;  %v75_v29 = vld [vmem:[%s1719_s1 + $0x170] sm:$0xff]  ;;  %v1034_v30 = vpack.c.bf16 %v92_v23, %v91_v22  ;;  %v109_v32 = vld [vmem:[%s1719_s1 + $0x280] sm:$0xff] }
  0x17   :  { %1025 = vmatpush3.bf16.msra.mxu1 %v1024_v63  ;;  %v76_v31 = vld [vmem:[%s1719_s1 + $0x178] sm:$0xff]  ;;  %v110_v33 = vld [vmem:[%s1719_s1 + $0x288] sm:$0xff]  ;;  %v141_v34 = vld [vmem:[%s1719_s1 + $0x380] sm:$0xff]  ;;  %v1004_v36 = vpack.c.bf16 %v44_v28, %v43_v27 }
  0x18   :  { %1027 = vmatprep.subr.bf16.mxu1 %v1026_v4  ;;  %v142_v35 = vld [vmem:[%s1719_s1 + $0x388] sm:$0xff]  ;;  %v1036_v37 = vpack.c.bf16 %v76_v31, %v75_v29  ;;  %v1038_v38 = vpack.c.bf16 %v110_v33, %v109_v32  ;;  %v93_v39 = vld [vmem:[%s1719_s1 + $0x200] sm:$0xff]  ;;  %v111_v44 = vld [vmem:[%s1719_s1 + $0x290] sm:$0xff] }
  0x19   :  { %997 = vmatpush3.bf16.msra.mxu0 %v996_v10  ;;  %v94_v40 = vld [vmem:[%s1719_s1 + $0x208] sm:$0xff]  ;;  %v125_v41 = vld [vmem:[%s1719_s1 + $0x300] sm:$0xff]  ;;  %v1070_v42 = vpack.c.bf16 %v142_v35, %v141_v34  ;;  %v112_v45 = vld [vmem:[%s1719_s1 + $0x298] sm:$0xff] }
  0x1a   :  { %999 = vmatprep.subr.bf16.mxu0 %v998_v14  ;;  %v126_v43 = vld [vmem:[%s1719_s1 + $0x308] sm:$0xff]  ;;  %v143_v46 = vld [vmem:[%s1719_s1 + $0x390] sm:$0xff]  ;;  %v144_v47 = vld [vmem:[%s1719_s1 + $0x398] sm:$0xff]  ;;  %v1040_v49 = vpack.c.bf16 %v94_v40, %v93_v39  ;;  %v1042_v52 = vpack.c.bf16 %v112_v45, %v111_v44 }
  0x1b   :  { %1029 = vmatpush3.bf16.msra.mxu1 %v1028_v13  ;;  %v21_v48 = vld [vmem:[%s1718_s0] sm:$0xff]  ;;  %v23_v50 = vld [vmem:[%s1718_s0 + $0x10] sm:$0xff]  ;;  %v1072_v51 = vpack.c.bf16 %v126_v43, %v125_v41  ;;  %v96_v54 = vld [vmem:[%s1719_s1 + $0x218] sm:$0xff]  ;;  %v1074_v56 = vpack.c.bf16 %v144_v47, %v143_v46 }
  0x1c   :  { %1031 = vmatprep.subr.bf16.mxu1 %v1030_v18  ;;  %v95_v53 = vld [vmem:[%s1719_s1 + $0x210] sm:$0xff]  ;;  %v128_v57 = vld [vmem:[%s1719_s1 + $0x318] sm:$0xff]  ;;  %v113_v58 = vld [vmem:[%s1719_s1 + $0x2a0] sm:$0xff] }
  0x1d   :  { %1001 = vmatpush3.bf16.msra.mxu0 %v1000_v24  ;;  %v127_v55 = vld [vmem:[%s1719_s1 + $0x310] sm:$0xff]  ;;  %v114_v59 = vld [vmem:[%s1719_s1 + $0x2a8] sm:$0xff]  ;;  %v145_v60 = vld [vmem:[%s1719_s1 + $0x3a0] sm:$0xff]  ;;  %v1044_v62 = vpack.c.bf16 %v96_v54, %v95_v53 }
  0x1e   :  { %1003 = vmatprep.subr.bf16.mxu0 %v1002_v26  ;;  %v146_v61 = vld [vmem:[%s1719_s1 + $0x3a8] sm:$0xff]  ;;  %v1076_v63 = vpack.c.bf16 %v128_v57, %v127_v55  ;;  %v1046_v0 = vpack.c.bf16 %v114_v59, %v113_v58  ;;  %v97_v1 = vld [vmem:[%s1719_s1 + $0x220] sm:$0xff]  ;;  %v115_v6 = vld [vmem:[%s1719_s1 + $0x2b0] sm:$0xff] }
  0x1f   :  { %1033 = vmatpush3.bf16.msra.mxu1 %v1032_v25  ;;  %v98_v2 = vld [vmem:[%s1719_s1 + $0x228] sm:$0xff]  ;;  %v129_v3 = vld [vmem:[%s1719_s1 + $0x320] sm:$0xff]  ;;  %v1078_v4 = vpack.c.bf16 %v146_v61, %v145_v60  ;;  %v116_v7 = vld [vmem:[%s1719_s1 + $0x2b8] sm:$0xff] }
  0x20   :  { %1035 = vmatprep.subr.bf16.mxu1 %v1034_v30  ;;  %v130_v5 = vld [vmem:[%s1719_s1 + $0x328] sm:$0xff]  ;;  %v147_v8 = vld [vmem:[%s1719_s1 + $0x3b0] sm:$0xff]  ;;  %v148_v9 = vld [vmem:[%s1719_s1 + $0x3b8] sm:$0xff]  ;;  %v1048_v10 = vpack.c.bf16 %v98_v2, %v97_v1  ;;  %v1050_v12 = vpack.c.bf16 %v116_v7, %v115_v6 }
  0x21   :  { %1005 = vmatpush3.bf16.msra.mxu0 %v1004_v36  ;;  %v1080_v11 = vpack.c.bf16 %v130_v5, %v129_v3  ;;  %v99_v13 = vld [vmem:[%s1719_s1 + $0x230] sm:$0xff]  ;;  %v100_v14 = vld [vmem:[%s1719_s1 + $0x238] sm:$0xff]  ;;  %v1082_v16 = vpack.c.bf16 %v148_v9, %v147_v8  ;;  %v117_v18 = vld [vmem:[%s1719_s1 + $0x2c0] sm:$0xff] }
  0x22   :  { %1039 = vmatprep.subr.bf16.mxu0 %v1038_v38  ;;  %v131_v15 = vld [vmem:[%s1719_s1 + $0x330] sm:$0xff]  ;;  %v132_v17 = vld [vmem:[%s1719_s1 + $0x338] sm:$0xff]  ;;  %v118_v19 = vld [vmem:[%s1719_s1 + $0x2c8] sm:$0xff]  ;;  %v1052_v22 = vpack.c.bf16 %v100_v14, %v99_v13 }
  0x23   :  { %1037 = vmatpush3.bf16.msra.mxu1 %v1036_v37  ;;  %v149_v20 = vld [vmem:[%s1719_s1 + $0x3c0] sm:$0xff]  ;;  %v150_v21 = vld [vmem:[%s1719_s1 + $0x3c8] sm:$0xff]  ;;  %v28_v25 = vld [vmem:[%s1718_s0 + $0x38] sm:$0xff]  ;;  %v1084_v26 = vpack.c.bf16 %v132_v17, %v131_v15  ;;  %v1054_v27 = vpack.c.bf16 %v118_v19, %v117_v18 }
  0x24   :  { %1071 = vmatprep.subr.bf16.mxu1 %v1070_v42  ;;  %229 = vmatmul.mubr.f32.vlgmr.msra.gmra.mrb[0].mxu0 %v21_v48  ;;  %v101_v23 = vld [vmem:[%s1719_s1 + $0x240] sm:$0xff]  ;;  %v26_v24 = vld [vmem:[%s1718_s0 + $0x28] sm:$0xff] }
  0x25   :  { %1041 = vmatpush3.bf16.msra.mxu0 %v1040_v49  ;;  %v102_v28 = vld [vmem:[%s1719_s1 + $0x248] sm:$0xff]  ;;  %v133_v29 = vld [vmem:[%s1719_s1 + $0x340] sm:$0xff] }
  0x26   :  { %299 = vmatmul.mubr.f32.vlgmr.msra.gmra.mrb[0].mxu1 %v23_v50  ;;  %1043 = vmatprep.subr.bf16.mxu0 %v1042_v52 }
  0x27   :  { %1073 = vmatpush3.bf16.msra.mxu1 %v1072_v51 }
  0x28   :  { %1075 = vmatprep.subr.bf16.mxu1 %v1074_v56 }
  0x29   :  { %1045 = vmatpush3.bf16.msra.mxu0 %v1044_v62 }
  0x2a   :  { %1047 = vmatprep.subr.bf16.mxu0 %v1046_v0 }
  0x2b   :  { %1077 = vmatpush3.bf16.msra.mxu1 %v1076_v63 }
  0x2c   :  { %1079 = vmatprep.subr.bf16.mxu1 %v1078_v4 }
  0x2d   :  { %1049 = vmatpush3.bf16.msra.mxu0 %v1048_v10 }
  0x2e   :  { %1051 = vmatprep.subr.bf16.mxu0 %v1050_v12 }
  0x2f   :  { %1081 = vmatpush3.bf16.msra.mxu1 %v1080_v11 }
  0x30   :  { %10 = vsyncpa [#allocation3], 0  ;;  %1083 = vmatprep.subr.bf16.mxu1 %v1082_v16  ;;  %v1086_v30 = vpack.c.bf16 %v150_v21, %v149_v20  ;;  %v134_v31 = vld [vmem:[%s1719_s1 + $0x348] sm:$0xff]  ;;  %v119_v32 = vld [vmem:[%s1719_s1 + $0x2d0] sm:$0xff]  ;;  %368 = vmatprep.mubr.f32.mxu0 %v26_v24  ;;  %v1056_v36 = vpack.c.bf16 %v102_v28, %v101_v23  ;;  %vm519_vm0 = vcmask 261120  }
  0x31   :  { %v120_v33 = vld [vmem:[%s1719_s1 + $0x2d8] sm:$0xff]  ;;  %v151_v34 = vld [vmem:[%s1719_s1 + $0x3d0] sm:$0xff]  ;;  %438 = vmatprep.mubr.f32.mxu1 %v28_v25  ;;  %1053 = vmatpush3.bf16.msra.mxu0 %v1052_v22  ;;  %v1088_v37 = vpack.c.bf16 %v134_v31, %v133_v29  ;;  %v121_v44 = vld [vmem:[%s1719_s1 + $0x2e0] sm:$0xff] }
  0x32   :  { %v152_v35 = vld [vmem:[%s1719_s1 + $0x3d8] sm:$0xff]  ;;  %1055 = vmatprep.subr.bf16.mxu0 %v1054_v27  ;;  %v1058_v38 = vpack.c.bf16 %v120_v33, %v119_v32  ;;  %v103_v39 = vld [vmem:[%s1719_s1 + $0x250] sm:$0xff]  ;;  %v122_v45 = vld [vmem:[%s1719_s1 + $0x2e8] sm:$0xff] }
  0x33   :  { %1085 = vmatpush3.bf16.msra.mxu1 %v1084_v26  ;;  %v104_v40 = vld [vmem:[%s1719_s1 + $0x258] sm:$0xff]  ;;  %v135_v41 = vld [vmem:[%s1719_s1 + $0x350] sm:$0xff]  ;;  %v1090_v42 = vpack.c.bf16 %v152_v35, %v151_v34  ;;  %v153_v46 = vld [vmem:[%s1719_s1 + $0x3e0] sm:$0xff]  ;;  %v1062_v50 = vpack.c.bf16 %v122_v45, %v121_v44 }
  0x34   :  { %1087 = vmatprep.subr.bf16.mxu1 %v1086_v30  ;;  %v136_v43 = vld [vmem:[%s1719_s1 + $0x358] sm:$0xff]  ;;  %v154_v47 = vld [vmem:[%s1719_s1 + $0x3e8] sm:$0xff]  ;;  %v1060_v48 = vpack.c.bf16 %v104_v40, %v103_v39  ;;  %v105_v51 = vld [vmem:[%s1719_s1 + $0x260] sm:$0xff] }
  0x35   :  { %1057 = vmatpush3.bf16.msra.mxu0 %v1056_v36  ;;  %v1092_v49 = vpack.c.bf16 %v136_v43, %v135_v41  ;;  %v106_v52 = vld [vmem:[%s1719_s1 + $0x268] sm:$0xff]  ;;  %v137_v53 = vld [vmem:[%s1719_s1 + $0x360] sm:$0xff]  ;;  %v1094_v54 = vpack.c.bf16 %v154_v47, %v153_v46  ;;  %v123_v56 = vld [vmem:[%s1719_s1 + $0x2f0] sm:$0xff] }
  0x36   :  { %1059 = vmatprep.subr.bf16.mxu0 %v1058_v38  ;;  %v138_v55 = vld [vmem:[%s1719_s1 + $0x368] sm:$0xff]  ;;  %v124_v57 = vld [vmem:[%s1719_s1 + $0x2f8] sm:$0xff]  ;;  %v155_v58 = vld [vmem:[%s1719_s1 + $0x3f0] sm:$0xff]  ;;  %v1064_v60 = vpack.c.bf16 %v106_v52, %v105_v51  ;;  %v1160_v38 = vmov 0.0  }
  0x37   :  { %1089 = vmatpush3.bf16.msra.mxu1 %v1088_v37  ;;  %v156_v59 = vld [vmem:[%s1719_s1 + $0x3f8] sm:$0xff]  ;;  %v1096_v61 = vpack.c.bf16 %v138_v55, %v137_v53  ;;  %v1066_v62 = vpack.c.bf16 %v124_v57, %v123_v56  ;;  %v107_v63 = vld [vmem:[%s1719_s1 + $0x270] sm:$0xff]  ;;  %v25_v6 = vld [vmem:[%s1718_s0 + $0x20] sm:$0xff] }
  0x38   :  { %1091 = vmatprep.subr.bf16.mxu1 %v1090_v42  ;;  %v108_v0 = vld [vmem:[%s1719_s1 + $0x278] sm:$0xff]  ;;  %v1098_v1 = vpack.c.bf16 %v156_v59, %v155_v58  ;;  %v139_v2 = vld [vmem:[%s1719_s1 + $0x370] sm:$0xff]  ;;  %v446_v8 = vld [vmem:[%s1721_s3 + $0x8] sm:$0xff] }
  0x39   :  { %1061 = vmatpush3.bf16.msra.mxu0 %v1060_v48  ;;  %v140_v3 = vld [vmem:[%s1719_s1 + $0x378] sm:$0xff]  ;;  %v1068_v4 = vpack.c.bf16 %v108_v0, %v107_v63  ;;  %v27_v7 = vld [vmem:[%s1718_s0 + $0x30] sm:$0xff]  ;;  %v454_v9 = vld [vmem:[%s1721_s3 + $0x48] sm:$0xff] }
  0x3a   :  { %1063 = vmatprep.subr.bf16.mxu0 %v1062_v50  ;;  %v1100_v5 = vpack.c.bf16 %v140_v3, %v139_v2  ;;  %v448_v10 = vld [vmem:[%s1721_s3 + $0x18] sm:$0xff]  ;;  %v1102_v11 = vpack.c.bf16 %v454_v9, %v446_v8  ;;  %v445_v13 = vld [vmem:[%s1721_s3] sm:$0xff]  ;;  %v447_v17 = vld [vmem:[%s1721_s3 + $0x10] sm:$0xff] }
  0x3b   :  { %1093 = vmatpush3.bf16.msra.mxu1 %v1092_v49  ;;  %v456_v12 = vld [vmem:[%s1721_s3 + $0x58] sm:$0xff]  ;;  %v453_v14 = vld [vmem:[%s1721_s3 + $0x40] sm:$0xff]  ;;  %v455_v18 = vld [vmem:[%s1721_s3 + $0x50] sm:$0xff] }
  0x3c   :  { %1095 = vmatprep.subr.bf16.mxu1 %v1094_v54  ;;  %v1110_v15 = vpack.c.bf16 %v456_v12, %v448_v10  ;;  %v1104_v16 = vpack.c.bf16 %v453_v14, %v445_v13  ;;  %v1112_v19 = vpack.c.bf16 %v455_v18, %v447_v17  ;;  %v462_v20 = vld [vmem:[%s1721_s3 + $0x88] sm:$0xff]  ;;  %v464_v22 = vld [vmem:[%s1721_s3 + $0x98] sm:$0xff]  ;;  %v461_v25 = vld [vmem:[%s1721_s3 + $0x80] sm:$0xff] }
  0x3d   :  { %1065 = vmatpush3.bf16.msra.mxu0 %v1064_v60  ;;  %v470_v21 = vld [vmem:[%s1721_s3 + $0xc8] sm:$0xff]  ;;  %v472_v24 = vld [vmem:[%s1721_s3 + $0xd8] sm:$0xff]  ;;  %v469_v26 = vld [vmem:[%s1721_s3 + $0xc0] sm:$0xff] }
  0x3e   :  { %1067 = vmatprep.subr.bf16.mxu0 %v1066_v62  ;;  %v1106_v23 = vpack.c.bf16 %v470_v21, %v462_v20  ;;  %v1114_v27 = vpack.c.bf16 %v472_v24, %v464_v22  ;;  %v1108_v28 = vpack.c.bf16 %v469_v26, %v461_v25  ;;  %v463_v29 = vld [vmem:[%s1721_s3 + $0x90] sm:$0xff]  ;;  %v450_v32 = vld [vmem:[%s1721_s3 + $0x28] sm:$0xff]  ;;  %v452_v34 = vld [vmem:[%s1721_s3 + $0x38] sm:$0xff] }
  0x3f   :  { %1097 = vmatpush3.bf16.msra.mxu1 %v1096_v61  ;;  %v471_v30 = vld [vmem:[%s1721_s3 + $0xd0] sm:$0xff]  ;;  %v458_v33 = vld [vmem:[%s1721_s3 + $0x68] sm:$0xff]  ;;  %v460_v36 = vld [vmem:[%s1721_s3 + $0x78] sm:$0xff] }
  0x40   :  { %1099 = vmatprep.subr.bf16.mxu1 %v1098_v1  ;;  %v1116_v31 = vpack.c.bf16 %v471_v30, %v463_v29  ;;  %v1118_v35 = vpack.c.bf16 %v458_v33, %v450_v32  ;;  %v1126_v37 = vpack.c.bf16 %v460_v36, %v452_v34  ;;  %v829_v40 = vld [vmem:[%s1720_s2] ss:$0 sm:$0xff]  ;;  %v451_v57 = vld [vmem:[%s1721_s3 + $0x30] sm:$0xff]  ;;  %v466_v59 = vld [vmem:[%s1721_s3 + $0xa8] sm:$0xff] }
  0x41   :  { %1069 = vmatpush3.bf16.msra.mxu0 %v1068_v4  ;;  %v449_v54 = vld [vmem:[%s1721_s3 + $0x20] sm:$0xff]  ;;  %v459_v58 = vld [vmem:[%s1721_s3 + $0x70] sm:$0xff]  ;;  %v474_v60 = vld [vmem:[%s1721_s3 + $0xe8] sm:$0xff] }
  0x42   :  { %1103 = vmatprep.subr.bf16.mxu0 %v1102_v11  ;;  %v457_v55 = vld [vmem:[%s1721_s3 + $0x60] sm:$0xff]  ;;  %v468_v61 = vld [vmem:[%s1721_s3 + $0xb8] sm:$0xff]  ;;  %v1128_v1 = vpack.c.bf16 %v459_v58, %v451_v57  ;;  %v1122_v4 = vpack.c.bf16 %v474_v60, %v466_v59  ;;  %v475_v8 = vld [vmem:[%s1721_s3 + $0xf0] sm:$0xff]  ;;  %v479_v11 = vlaneseq }
  0x43   :  { %1101 = vmatpush3.bf16.msra.mxu1 %v1100_v5  ;;  %v476_v62 = vld [vmem:[%s1721_s3 + $0xf8] sm:$0xff]  ;;  %v1120_v0 = vpack.c.bf16 %v457_v55, %v449_v54  ;;  %v465_v2 = vld [vmem:[%s1721_s3 + $0xa0] sm:$0xff] }
  0x44   :  { %369 = vmatmul.mubr.f32.vlgmr.msra.gmra.mrb[2].mxu0 %v25_v6  ;;  %1111 = vmatprep.subr.bf16.mxu1 %v1110_v15  ;;  %v1130_v5 = vpack.c.bf16 %v476_v62, %v468_v61  ;;  %v473_v6 = vld [vmem:[%s1721_s3 + $0xe0] sm:$0xff]  ;;  %v480_v12 = vshrl.u32 %v479_v11, 7 }
  0x45   :  { %1105 = vmatpush1.bf16.msra.mxu0 %v1104_v16  ;;  %587 = vmatprep.mubr.f32.mxu0 %v1160_v38  ;;  %v1124_v9 = vpack.c.bf16 %v473_v6, %v465_v2  ;;  %v477_v15 = vld [vmem:[%s1722_s4] sm:$0xff]  ;;  %s1161_s4 = smov [#allocation2]  }
  0x46   :  { %439 = vmatmul.mubr.f32.vlgmr.msra.gmra.mrb[2].mxu1 %v27_v7  ;;  %1107 = vmatprep.subr.bf16.mxu0 %v1106_v23  ;;  %v467_v7 = vld [vmem:[%s1721_s3 + $0xb0] sm:$0xff]  ;;  %v481_v13 = vsub.s32 0, %v480_v12  ;;  %v489_v14 = vsub.s32 2, %v480_v12  ;;  %v485_v16 = vsub.s32 1, %v480_v12  ;;  %v493_v17 = vsub.s32 3, %v480_v12  ;;  %s821_s25 = sshll.u32 %s1161_s4, 4  ;;  %s822_s25 = int_to_ptr.vmem [resolvable:$true] %s821_s25 }
  0x47   :  { %1113 = vmatpush1.bf16.msra.mxu1 %v1112_v19  ;;  %658 = vmatprep.mubr.f32.mxu1 %v1160_v38  ;;  %v1132_v10 = vpack.c.bf16 %v475_v8, %v467_v7  ;;  %v505_v29 = vsub.s32 6, %v480_v12  ;;  %v501_v32 = vsub.s32 5, %v480_v12  ;;  %v509_v33 = vsub.s32 7, %v480_v12  ;;  %s1136_s26 = scalar_lea.vmem %s822_s25, 1024  ;;  %p1141_p1 = scmp.lt.s32.totalorder %s822_s25, %s822_s25 }
  0x48   :  { %1115 = vmatprep.subr.bf16.mxu1 %v1114_v27  ;;  %v482_v18 = vrot.slane %v477_v15, %v481_v13  ;;  %v490_v19 = vrot.slane %v477_v15, %v489_v14  ;;  %v486_v20 = vrot.slane %v477_v15, %v485_v16  ;;  %v494_v21 = vrot.slane %v477_v15, %v493_v17  ;;  %p1137_p0 = scmp.ne.s32.totalorder %s822_s25, %s1136_s26  ;;  %p1142_p2 = scmp.lt.s32.totalorder %s1136_s26, %s1136_s26 }
  0x49   :  { %1109 = vmatpush1.bf16.msra.mxu0 %v1108_v28  ;;  %v497_v28 = vsub.s32 4, %v480_v12  ;;  %v502_v36 = vrot.slane %v477_v15, %v501_v32 }
  0x4a   :  { %1119 = vmatprep.subr.bf16.mxu0 %v1118_v35  ;;  %v506_v35 = vrot.slane %v477_v15, %v505_v29  ;;  %p1143_p3 = por %p1142_p2, %p1141_p1 }
  0x4b   :  { %1117 = vmatpush1.bf16.msra.mxu1 %v1116_v31  ;;  %v498_v34 = vrot.slane %v477_v15, %v497_v28 }
  0x4c   :  { %1127 = vmatprep.subr.bf16.mxu1 %v1126_v37  ;;  %v510_v37 = vrot.slane %v477_v15, %v509_v33  ;;  %p1144_p4 = pnand %p1143_p3, %p1137_p0 }
  0xf7   :  { %v866_v39 = vpop.f32.mrb[0].mxu0 }
  0xf8   :  { %v867_v41 = vpop.f32.mrb[1].mxu0 }
  0xf9   :  { %v901_v42 = vpop.f32.mrb[0].mxu1  ;;  %v868_v43 = vadd.f32 %v867_v41, %v866_v39 }
  0xfa   :  { %v902_v44 = vpop.f32.mrb[1].mxu1 }
  0xfb   :  { %v903_v45 = vadd.f32 %v902_v44, %v901_v42  ;;  %v231_v46 = vadd.f32 %v868_v43, %v829_v40 }
  0xfd   :  { %v301_v47 = vadd.f32 %v903_v45, %v231_v46 }
 0x117   :  { %v936_v48 = vpop.f32.mrb[2].mxu0 }
 0x118   :  { %v937_v49 = vpop.f32.mrb[3].mxu0 }
 0x119   :  { %v971_v50 = vpop.f32.mrb[2].mxu1  ;;  %v938_v51 = vadd.f32 %v937_v49, %v936_v48 }
 0x11a   :  { %v972_v52 = vpop.f32.mrb[3].mxu1 }
 0x11b   :  { %v973_v53 = vadd.f32 %v972_v52, %v971_v50  ;;  %v371_v56 = vadd.f32 %v938_v51, %v301_v47 }
 0x11d   :  { %v441_v63 = vadd.f32 %v973_v53, %v371_v56 }
 0x11f   :  { %v444_v3 = vmax.f32 %v441_v63, 0.0 }
 0x121   :  { %830 = vmatmul.mubr.msk.f32.vlgmr.msra.gmra.mrb[4].mxu0 %vm519_vm0, %v444_v3  ;;  %831 = vmatmul.mubr.msk.f32.vlgmr.msra.gmra.mrb[4].mxu1 %vm519_vm0, %v444_v3 }
 0x122   :  { %1121 = vmatpush1.bf16.msra.mxu0 %v1120_v0  ;;  %1129 = vmatpush1.bf16.msra.mxu1 %v1128_v1 }
 0x123   :  { %1123 = vmatprep.subr.bf16.mxu0 %v1122_v4  ;;  %1131 = vmatprep.subr.bf16.mxu1 %v1130_v5 }
 0x124   :  { %729 = vmatprep.mubr.f32.mxu0 %v1160_v38  ;;  %800 = vmatprep.mubr.f32.mxu1 %v1160_v38 }
 0x126   :  { %1125 = vmatpush1.bf16.msra.mxu0 %v1124_v9  ;;  %1133 = vmatpush1.bf16.msra.mxu1 %v1132_v10 }
 0x129   :  { %832 = vmatmul.mubr.msk.f32.vlgmr.msra.gmra.mrb[6].mxu0 %vm519_vm0, %v444_v3  ;;  %833 = vmatmul.mubr.msk.f32.vlgmr.msra.gmra.mrb[6].mxu1 %vm519_vm0, %v444_v3 }
 0x1f4   :  { %v589_v22 = vpop.f32.mrb[4].mxu0  ;;  %v660_v23 = vpop.f32.mrb[4].mxu1 }
 0x1f5   :  { %v590_v24 = vadd.f32 %v589_v22, %v482_v18  ;;  %v661_v25 = vadd.f32 %v660_v23, %v490_v19  ;;  %v591_v26 = vpop.f32.mrb[5].mxu0  ;;  %v662_v27 = vpop.f32.mrb[5].mxu1 }
 0x1f6   :  { %v592_v30 = vadd.f32 %v591_v26, %v486_v20  ;;  %v663_v31 = vadd.f32 %v662_v27, %v494_v21 }
 0x1f7   :  { %807 = vst [vmem:[#allocation2] sm:$0xff] %v590_v24  ;;  %809 = vst [vmem:[#allocation2 + $0x10] sm:$0xff] %v661_v25 }
 0x1f8   :  { %808 = vst [vmem:[#allocation2 + $0x8] sm:$0xff] %v592_v30  ;;  %810 = vst [vmem:[#allocation2 + $0x18] sm:$0xff] %v663_v31 }
 0x1fc   :  { %v731_v38 = vpop.f32.mrb[6].mxu0  ;;  %v802_v39 = vpop.f32.mrb[6].mxu1 }
 0x1fd   :  { %v732_v40 = vadd.f32 %v731_v38, %v498_v34  ;;  %v803_v41 = vadd.f32 %v802_v39, %v506_v35  ;;  %v733_v42 = vpop.f32.mrb[7].mxu0  ;;  %v804_v43 = vpop.f32.mrb[7].mxu1 }
 0x1fe   :  { %v734_v44 = vadd.f32 %v733_v42, %v502_v36  ;;  %v805_v45 = vadd.f32 %v804_v43, %v510_v37 }
 0x1ff   :  { %811 = vst [vmem:[#allocation2 + $0x20] sm:$0xff] %v732_v40  ;;  %813 = vst [vmem:[#allocation2 + $0x30] sm:$0xff] %v803_v41 }
 0x200   :  { %812 = vst [vmem:[#allocation2 + $0x28] sm:$0xff] %v734_v44  ;;  %814 = vst [vmem:[#allocation2 + $0x38] sm:$0xff] %v805_v45 }
 0x201   :  { %1147 = shalt.err (!%p1144_p4)
}
 0x202   :  { %s1148_s29 = scalar_lea.hbm %s1723_s5, 1024 }
 0x203   :  { %p1149_p5 = scmp.ne.s32.totalorder %s1723_s5, %s1148_s29  ;;  %p1152_p6 = scmp.lt.u32.totalorder %s1148_s29, %s1723_s5 }
 0x205   :  { %p1154_p7 = pnand %p1152_p6, %p1149_p5 }
 0x207   :  { %1157 = shalt.err (!%p1154_p7)
}
 0x208   :  { %824 = dma.vmem_to_hbm [thread:$0]  %s822_s25, 1024, %s1723_s5, [#allocation3]  }
 0x209   :  { %1158 = dma.done.wait [#allocation3], 1024  }
 0x20a   :  { %1159 = vsyncadd [#allocation3], 4294966272 }
 0x20b   :  { %828 = vsyncpa [#allocation3], 1 }

</bundles_post_ra>
